<compile_context>
chip_gen: v5e
topology: v5e:2x2
jax: 0.10.0
libtpu: 0.0.40
codegen_flags: <defaults>
</compile_context>

<pallas_src>
import functools

import jax
import jax.numpy as jnp
from jax.experimental import pallas as pl
from jax.experimental.pallas import tpu as pltpu


# ---------------------------------------------------------------------------
# Fused kernel body: full MLP forward for one batch tile
# ---------------------------------------------------------------------------
def _link_predictor_kernel(xi_ref, xj_ref, w1_ref, b1_ref, wm_ref, bm_ref,
                           wl_ref, bl_ref, o_ref, *, num_mid):
    """out = sigmoid( MLP(x_i * x_j) ) for one (TILE_M, ...) batch tile.

    w1_ref: (in_ch, Hpad)      first layer (natural K, padded out-cols)
    wm_ref: (max(num_mid,1), Hpad, Hpad)  stacked hidden layers (zero-padded)
    wl_ref: (Hpad, OUTpad)     last layer
    Zero padding is exact: padded columns stay 0 through dot+bias+relu; only
    the discarded output columns see sigmoid(0)=0.5 and are sliced off.
    """
    x = xi_ref[...] * xj_ref[...]                                   # (TM, in_ch)

    # First layer + ReLU.
    x = jnp.dot(x, w1_ref[...], preferred_element_type=jnp.float32) + b1_ref[...]
    x = jnp.maximum(x, 0.0)
    # TODO(synk): dropout (training mode) would go here.

    # Hidden layers + ReLU (static unroll; num_mid may be 0).
    for i in range(num_mid):
        x = jnp.dot(x, wm_ref[i], preferred_element_type=jnp.float32) + bm_ref[i]
        x = jnp.maximum(x, 0.0)
        # TODO(synk): dropout (training mode) would go here.

    # Last layer + sigmoid (approx reciprocal -> EUP slot, VALU-free).
    x = jnp.dot(x, wl_ref[...], preferred_element_type=jnp.float32) + bl_ref[...]
    o_ref[...] = pl.reciprocal(1.0 + jnp.exp(-x), approx=True)


# ---------------------------------------------------------------------------
# Helpers
# ---------------------------------------------------------------------------
def _round_up(v, m):
    return -(-v // m) * m


def _pad2(a, rows, cols):
    r, c = a.shape
    return jnp.pad(a, ((0, rows - r), (0, cols - c)))


# ---------------------------------------------------------------------------
# One-time parameter preparation (hoisted out of the per-call path)
# ---------------------------------------------------------------------------
def prepare_params(weights, biases):
    """Pad per-layer and stack the equal-shaped hidden layers, once."""
    num_layers = len(weights)
    in_ch = weights[0].shape[0]
    hidden = weights[0].shape[1]
    out_ch = weights[-1].shape[1]
    h_pad = _round_up(hidden, 128)
    out_pad = _round_up(out_ch, 128)

    w1 = _pad2(weights[0], in_ch, h_pad)                               # (in_ch, Hp)
    b1 = _pad2(biases[0].reshape(1, -1), 1, h_pad)                     # (1, Hp)

    num_mid = num_layers - 2
    if num_mid > 0:
        wm = jnp.stack([_pad2(w, h_pad, h_pad) for w in weights[1:-1]])       # (Lm,Hp,Hp)
        bm = jnp.stack([_pad2(b.reshape(1, -1), 1, h_pad) for b in biases[1:-1]])
    else:  # dummy operands, never read (static loop has zero iterations)
        wm = jnp.zeros((1, h_pad, h_pad), jnp.float32)
        bm = jnp.zeros((1, 1, h_pad), jnp.float32)

    wl = _pad2(weights[-1], h_pad, out_pad)                            # (Hp, Op)
    bl = _pad2(biases[-1].reshape(1, -1), 1, out_pad)                  # (1, Op)

    return dict(w1=w1, b1=b1, wm=wm, bm=bm, wl=wl, bl=bl,
                num_mid=num_mid, in_ch=in_ch, out_ch=out_ch,
                h_pad=h_pad, out_pad=out_pad)


# ---------------------------------------------------------------------------
# Forward: batch-tiled single pallas_call
# ---------------------------------------------------------------------------
def link_predictor_forward(x_i, x_j, params, *, tile_m=512):
    """weights resident in VMEM, batch streamed through a 1-D parallel grid."""
    batch, in_ch = x_i.shape
    assert in_ch == params["in_ch"]
    out_ch, h_pad, out_pad = params["out_ch"], params["h_pad"], params["out_pad"]

    # TILE_M: multiple of 8 sublanes (f32); default 512 keeps the 256-row MXU
    # of v6e/v7x full and amortizes per-grid-step overhead; shrink for tiny B.
    tile_m = min(tile_m, _round_up(max(batch, 8), 8))
    b_pad = _round_up(batch, tile_m)
    grid = (pl.cdiv(b_pad, tile_m),)

    xi_p = jnp.pad(x_i, ((0, b_pad - batch), (0, 0)))    # natural feature width
    xj_p = jnp.pad(x_j, ((0, b_pad - batch), (0, 0)))

    # VMEM budget: 2 buffers per streamed array + resident weights + headroom.
    f32 = 4
    stream_bytes = 2 * (2 * tile_m * in_ch + tile_m * out_pad) * f32
    weight_bytes = 2 * f32 * sum(int(params[k].size) for k in
                                 ("w1", "b1", "wm", "bm", "wl", "bl"))
    interm_bytes = 4 * tile_m * h_pad * f32
    vmem_limit = int(min(64 * 2**20,
                         max(32 * 2**20, 2 * (stream_bytes + weight_bytes + interm_bytes))))

    out_p = pl.pallas_call(
        functools.partial(_link_predictor_kernel, num_mid=params["num_mid"]),
        out_shape=jax.ShapeDtypeStruct((b_pad, out_pad), jnp.float32),
        grid=grid,
        in_specs=[
            # streamed batch tiles (double-buffered by the pipeline)
            pl.BlockSpec((tile_m, in_ch), lambda i: (i, 0)),
            pl.BlockSpec((tile_m, in_ch), lambda i: (i, 0)),
            # weights: constant index_map -> DMA'd once, VMEM-resident
            pl.BlockSpec(params["w1"].shape, lambda i: (0, 0)),
            pl.BlockSpec(params["b1"].shape, lambda i: (0, 0)),
            pl.BlockSpec(params["wm"].shape, lambda i: (0, 0, 0)),
            pl.BlockSpec(params["bm"].shape, lambda i: (0, 0, 0)),
            pl.BlockSpec(params["wl"].shape, lambda i: (0, 0)),
            pl.BlockSpec(params["bl"].shape, lambda i: (0, 0)),
        ],
        out_specs=pl.BlockSpec((tile_m, out_pad), lambda i: (i, 0)),
        compiler_params=pltpu.CompilerParams(
            dimension_semantics=("parallel",),   # megacore: split batch tiles
            vmem_limit_bytes=vmem_limit,
        ),
    )(xi_p, xj_p, params["w1"], params["b1"], params["wm"], params["bm"],
      params["wl"], params["bl"])

    return out_p[:batch, :out_ch]


# ---------------------------------------------------------------------------
# Parameter construction (deterministic, synthetic)
# ---------------------------------------------------------------------------
def init_params(key, in_channels, hidden_channels, out_channels, num_layers):
    dims = [in_channels] + [hidden_channels] * (num_layers - 1) + [out_channels]
    weights, biases = [], []
    for i in range(num_layers):
        key, kw, kb = jax.random.split(key, 3)
        c_in, c_out = dims[i], dims[i + 1]
        bound = 1.0 / jnp.sqrt(jnp.float32(c_in))
        weights.append(jax.random.uniform(kw, (c_in, c_out), jnp.float32,
                                          -bound, bound))
        biases.append(jax.random.uniform(kb, (c_out,), jnp.float32,
                                         -bound, bound))
    return weights, biases


# ---------------------------------------------------------------------------
# Main: run once, check vs pure-JAX reference
# ---------------------------------------------------------------------------
if __name__ == "__main__":
    NUM_EDGES = 16           # batch of (i, j) node-pair embeddings
    IN_CHANNELS = 32
    HIDDEN_CHANNELS = 64
    OUT_CHANNELS = 1
    NUM_LAYERS = 3
    # dropout p is irrelevant in eval mode (identity)

    key = jax.random.PRNGKey(0)
    k_i, k_j, k_p = jax.random.split(key, 3)
    x_i = jax.random.normal(k_i, (NUM_EDGES, IN_CHANNELS), jnp.float32)
    x_j = jax.random.normal(k_j, (NUM_EDGES, IN_CHANNELS), jnp.float32)
    weights, biases = init_params(k_p, IN_CHANNELS, HIDDEN_CHANNELS,
                                  OUT_CHANNELS, NUM_LAYERS)

    params = prepare_params(weights, biases)     # one-time padding/stacking
    out = link_predictor_forward(x_i, x_j, params)
    out = jax.block_until_ready(out)
    assert out.shape == (NUM_EDGES, OUT_CHANNELS), out.shape
    assert out.dtype == jnp.float32

    # Pure-JAX reference (matches the PyTorch module in eval mode).
    def ref_forward(xi, xj, ws, bs):
        x = xi * xj
        for idx, (w, b) in enumerate(zip(ws, bs)):
            x = x @ w + b
            if idx < len(ws) - 1:
                x = jnp.maximum(x, 0.0)
        return 1.0 / (1.0 + jnp.exp(-x))

    ref = ref_forward(x_i, x_j, weights, biases)
    max_err = float(jnp.max(jnp.abs(out - ref)))
    # tolerance covers the EUP approx-reciprocal in the in-kernel sigmoid
    assert jnp.allclose(out, ref, atol=2e-3, rtol=2e-3), max_err

    print("KERNEL_OK")
</pallas_src>

<mosaic_0001>
module attributes {stable_mosaic.version = 11 : i64} {
  func.func @_link_predictor_kernel(%arg0: i32, %arg1: memref<16x32xf32, #tpu.memory_space<vmem>>, %arg2: memref<16x32xf32, #tpu.memory_space<vmem>>, %arg3: memref<32x128xf32, #tpu.memory_space<vmem>>, %arg4: memref<1x128xf32, #tpu.memory_space<vmem>>, %arg5: memref<1x128x128xf32, #tpu.memory_space<vmem>>, %arg6: memref<1x1x128xf32, #tpu.memory_space<vmem>>, %arg7: memref<128x128xf32, #tpu.memory_space<vmem>>, %arg8: memref<1x128xf32, #tpu.memory_space<vmem>>, %arg9: memref<16x128xf32, #tpu.memory_space<vmem>>) attributes {dimension_semantics = [#tpu.dimension_semantics<parallel>], iteration_bounds = array<i64: 1>, scalar_prefetch = 0 : i64, scratch_operands = 0 : i64, tpu.core_type = #tpu.core_type<tc>, window_params = [{transform_indices = @transform_0, window_bounds = array<i64: 16, 32>}, {transform_indices = @transform_1, window_bounds = array<i64: 16, 32>}, {pipeline_mode = #tpu.pipeline_mode<synchronous>, transform_indices = @transform_2, window_bounds = array<i64: 32, 128>}, {pipeline_mode = #tpu.pipeline_mode<synchronous>, transform_indices = @transform_3, window_bounds = array<i64: 1, 128>}, {pipeline_mode = #tpu.pipeline_mode<synchronous>, transform_indices = @transform_4, window_bounds = array<i64: 1, 128, 128>}, {pipeline_mode = #tpu.pipeline_mode<synchronous>, transform_indices = @transform_5, window_bounds = array<i64: 1, 1, 128>}, {pipeline_mode = #tpu.pipeline_mode<synchronous>, transform_indices = @transform_6, window_bounds = array<i64: 128, 128>}, {pipeline_mode = #tpu.pipeline_mode<synchronous>, transform_indices = @transform_7, window_bounds = array<i64: 1, 128>}, {transform_indices = @transform_8, window_bounds = array<i64: 16, 128>}]} {
    %c0 = arith.constant 0 : index
    %c0_0 = arith.constant 0 : index
    %0 = vector.load %arg1[%c0, %c0_0] : memref<16x32xf32, #tpu.memory_space<vmem>>, vector<16x32xf32>
    %c0_1 = arith.constant 0 : index
    %c0_2 = arith.constant 0 : index
    %1 = vector.load %arg2[%c0_1, %c0_2] : memref<16x32xf32, #tpu.memory_space<vmem>>, vector<16x32xf32>
    %2 = arith.mulf %0, %1 : vector<16x32xf32>
    %c0_3 = arith.constant 0 : index
    %c0_4 = arith.constant 0 : index
    %3 = vector.load %arg3[%c0_3, %c0_4] : memref<32x128xf32, #tpu.memory_space<vmem>>, vector<32x128xf32>
    %cst = arith.constant dense<0.000000e+00> : vector<16x128xf32>
    %4 = tpu.matmul %2, %3, %cst {dimension_numbers = #tpu.dot_dimension_numbers<[1], [0], [0], [1], [0, 0, 1, 1], [], []>} : vector<16x32xf32>, vector<32x128xf32>, vector<16x128xf32> -> vector<16x128xf32>
    %c0_5 = arith.constant 0 : index
    %c0_6 = arith.constant 0 : index
    %5 = vector.load %arg4[%c0_5, %c0_6] : memref<1x128xf32, #tpu.memory_space<vmem>>, vector<1x128xf32>
    %6 = vector.broadcast %5 : vector<1x128xf32> to vector<16x128xf32>
    %7 = arith.addf %4, %6 : vector<16x128xf32>
    %cst_7 = arith.constant 0.000000e+00 : f32
    %8 = vector.broadcast %cst_7 : f32 to vector<16x128xf32>
    %9 = arith.maximumf %7, %8 : vector<16x128xf32>
    %c0_8 = arith.constant 0 : index
    %c0_9 = arith.constant 0 : index
    %c0_10 = arith.constant 0 : index
    %10 = vector.load %arg5[%c0_8, %c0_9, %c0_10] : memref<1x128x128xf32, #tpu.memory_space<vmem>>, vector<1x128x128xf32>
    %11 = vector.shape_cast %10 : vector<1x128x128xf32> to vector<128x128xf32>
    %cst_11 = arith.constant dense<0.000000e+00> : vector<16x128xf32>
    %12 = tpu.matmul %9, %11, %cst_11 {dimension_numbers = #tpu.dot_dimension_numbers<[1], [0], [0], [1], [0, 0, 1, 1], [], []>} : vector<16x128xf32>, vector<128x128xf32>, vector<16x128xf32> -> vector<16x128xf32>
    %c0_12 = arith.constant 0 : index
    %c0_13 = arith.constant 0 : index
    %c0_14 = arith.constant 0 : index
    %13 = vector.load %arg6[%c0_12, %c0_13, %c0_14] : memref<1x1x128xf32, #tpu.memory_space<vmem>>, vector<1x1x128xf32>
    %14 = vector.shape_cast %13 : vector<1x1x128xf32> to vector<1x128xf32>
    %15 = vector.broadcast %14 : vector<1x128xf32> to vector<16x128xf32>
    %16 = arith.addf %12, %15 : vector<16x128xf32>
    %cst_15 = arith.constant 0.000000e+00 : f32
    %17 = vector.broadcast %cst_15 : f32 to vector<16x128xf32>
    %18 = arith.maximumf %16, %17 : vector<16x128xf32>
    %c0_16 = arith.constant 0 : index
    %c0_17 = arith.constant 0 : index
    %19 = vector.load %arg7[%c0_16, %c0_17] : memref<128x128xf32, #tpu.memory_space<vmem>>, vector<128x128xf32>
    %cst_18 = arith.constant dense<0.000000e+00> : vector<16x128xf32>
    %20 = tpu.matmul %18, %19, %cst_18 {dimension_numbers = #tpu.dot_dimension_numbers<[1], [0], [0], [1], [0, 0, 1, 1], [], []>} : vector<16x128xf32>, vector<128x128xf32>, vector<16x128xf32> -> vector<16x128xf32>
    %c0_19 = arith.constant 0 : index
    %c0_20 = arith.constant 0 : index
    %21 = vector.load %arg8[%c0_19, %c0_20] : memref<1x128xf32, #tpu.memory_space<vmem>>, vector<1x128xf32>
    %22 = vector.broadcast %21 : vector<1x128xf32> to vector<16x128xf32>
    %23 = arith.addf %20, %22 : vector<16x128xf32>
    %cst_21 = arith.constant 0.000000e+00 : f32
    %24 = vector.broadcast %cst_21 : f32 to vector<16x128xf32>
    %25 = arith.subf %24, %23 : vector<16x128xf32>
    %26 = math.exp %25 : vector<16x128xf32>
    %cst_22 = arith.constant 1.000000e+00 : f32
    %27 = vector.broadcast %cst_22 : f32 to vector<16x128xf32>
    %28 = arith.addf %27, %26 : vector<16x128xf32>
    %29 = tpu.reciprocal %28 {approx = true} : vector<16x128xf32> -> vector<16x128xf32>
    %c0_23 = arith.constant 0 : index
    %c0_24 = arith.constant 0 : index
    %30 = vector.load %arg9[%c0_23, %c0_24] : memref<16x128xf32, #tpu.memory_space<vmem>>, vector<16x128xf32>
    tpu.vector_store %arg9[%c0_23, %c0_24], %29 {strides = array<i32>} : memref<16x128xf32, #tpu.memory_space<vmem>>, vector<16x128xf32>,
    return
  }
  func.func @transform_0(%arg0: i32) -> (i32, i32) {
    %c0_i32 = arith.constant 0 : i32
    %c0_i32_0 = arith.constant 0 : i32
    return %arg0, %c0_i32 : i32, i32
  }
  func.func @transform_1(%arg0: i32) -> (i32, i32) {
    %c0_i32 = arith.constant 0 : i32
    %c0_i32_0 = arith.constant 0 : i32
    return %arg0, %c0_i32 : i32, i32
  }
  func.func @transform_2(%arg0: i32) -> (i32, i32) {
    %c0_i32 = arith.constant 0 : i32
    %c0_i32_0 = arith.constant 0 : i32
    %c0_i32_1 = arith.constant 0 : i32
    return %c0_i32, %c0_i32_0 : i32, i32
  }
  func.func @transform_3(%arg0: i32) -> (i32, i32) {
    %c0_i32 = arith.constant 0 : i32
    %c0_i32_0 = arith.constant 0 : i32
    %c0_i32_1 = arith.constant 0 : i32
    return %c0_i32, %c0_i32_0 : i32, i32
  }
  func.func @transform_4(%arg0: i32) -> (i32, i32, i32) {
    %c0_i32 = arith.constant 0 : i32
    %c0_i32_0 = arith.constant 0 : i32
    %c0_i32_1 = arith.constant 0 : i32
    %c0_i32_2 = arith.constant 0 : i32
    return %c0_i32, %c0_i32_0, %c0_i32_1 : i32, i32, i32
  }
  func.func @transform_5(%arg0: i32) -> (i32, i32, i32) {
    %c0_i32 = arith.constant 0 : i32
    %c0_i32_0 = arith.constant 0 : i32
    %c0_i32_1 = arith.constant 0 : i32
    %c0_i32_2 = arith.constant 0 : i32
    return %c0_i32, %c0_i32_0, %c0_i32_1 : i32, i32, i32
  }
  func.func @transform_6(%arg0: i32) -> (i32, i32) {
    %c0_i32 = arith.constant 0 : i32
    %c0_i32_0 = arith.constant 0 : i32
    %c0_i32_1 = arith.constant 0 : i32
    return %c0_i32, %c0_i32_0 : i32, i32
  }
  func.func @transform_7(%arg0: i32) -> (i32, i32) {
    %c0_i32 = arith.constant 0 : i32
    %c0_i32_0 = arith.constant 0 : i32
    %c0_i32_1 = arith.constant 0 : i32
    return %c0_i32, %c0_i32_0 : i32, i32
  }
  func.func @transform_8(%arg0: i32) -> (i32, i32) {
    %c0_i32 = arith.constant 0 : i32
    %c0_i32_0 = arith.constant 0 : i32
    return %arg0, %c0_i32 : i32, i32
  }
}

</mosaic_0001>

<bundles_post_ra>
// kernel: tpu_custom_call.1
= control target key start
LH: loop header
LB: loop body
LE: loop exit
PB: predicated region body
PF: predicated region fallthrough
CT: control target
= control target key end

     0   :  { %13 = vsyncpa [#allocation3], 0  ;;  %s564_s0 = inlined_call_operand.hbm [shape: f32[16,32], index: 0, kind: input, shape index: {}]   ;;  %s565_s1 = inlined_call_operand.hbm [shape: f32[16,32], index: 1, kind: input, shape index: {}]   ;;  %s566_s2 = inlined_call_operand.hbm [shape: f32[32,128], index: 2, kind: input, shape index: {}]   ;;  %s567_s3 = inlined_call_operand.vmem [shape: f32[1,128], index: 3, kind: input, shape index: {}]   ;;  %s568_s4 = inlined_call_operand.hbm [shape: f32[1,128,128], index: 4, kind: input, shape index: {}]   ;;  %s569_s5 = inlined_call_operand.vmem [shape: f32[1,1,128], index: 5, kind: input, shape index: {}]   ;;  %s570_s6 = inlined_call_operand.hbm [shape: f32[128,128], index: 6, kind: input, shape index: {}]   ;;  %s571_s7 = inlined_call_operand.vmem [shape: f32[1,128], index: 7, kind: input, shape index: {}]   ;;  %s572_s8 = inlined_call_operand.hbm [shape: f32[16,128], index: 8, kind: output, shape index: {}]  }
   0x1   :  { %14 = vsyncpa [#allocation6], 0 }
   0x2   :  { %15 = vsyncpa [#allocation9], 0 }
   0x3   :  { %16 = vsyncpa [#allocation4], 0  ;;  %s34_s29 = sshll.u32 %s565_s1, 4  ;;  %s464_s30 = smov [#allocation5]   ;;  %s35_s29 = int_to_ptr.hbm [resolvable:$true] %s34_s29 }
   0x4   :  { %s36_s9 = sshll.u32 %s464_s30, 4  ;;  %s62_s12 = sshll.u32 %s568_s4, 4  ;;  %s37_s9 = int_to_ptr.vmem [resolvable:$true] %s36_s9  ;;  %s63_s12 = int_to_ptr.hbm [resolvable:$true] %s62_s12 }
   0x5   :  { %s465_s13 = smov 128   ;;  %s466_s14 = smov 8  }
   0x6   :  { %42 = dma.hbm_to_vmem [thread:$0]  %s35_s29, 256, %s37_s9, [#allocation6], %s465_s13, %s465_s13, %s466_s14  }
   0x7   :  { %s467_s15 = smov [#allocation8]   ;;  %s21_s1 = sshll.u32 %s564_s0, 4  ;;  %s22_s1 = int_to_ptr.hbm [resolvable:$true] %s21_s1 }
   0x8   :  { %s64_s16 = sshll.u32 %s467_s15, 4  ;;  %s47_s20 = sshll.u32 %s566_s2, 4  ;;  %s65_s16 = int_to_ptr.vmem [resolvable:$true] %s64_s16  ;;  %s48_s20 = int_to_ptr.hbm [resolvable:$true] %s47_s20 }
   0x9   :  { %70 = dma.hbm_to_vmem [thread:$0]  %s63_s12, 2048, %s65_s16, [#allocation9], %s465_s13, %s465_s13, %s466_s14  }
   0xa   :  { %s468_s21 = smov [#allocation2]   ;;  %s469_s23 = smov [#allocation7]  }
   0xb   :  { %s23_s22 = sshll.u32 %s468_s21, 4  ;;  %s49_s0 = sshll.u32 %s469_s23, 4  ;;  %s24_s22 = int_to_ptr.vmem [resolvable:$true] %s23_s22  ;;  %s50_s0 = int_to_ptr.vmem [resolvable:$true] %s49_s0 }
   0xc   :  { %29 = dma.hbm_to_vmem [thread:$0]  %s22_s1, 256, %s24_s22, [#allocation3], %s465_s13, %s465_s13, %s466_s14  }
   0xd   :  { %s77_s26 = sshll.u32 %s570_s6, 4  ;;  %s470_s2 = smov [#allocation10]   ;;  %s78_s26 = int_to_ptr.hbm [resolvable:$true] %s77_s26 }
   0xe   :  { %55 = dma.hbm_to_vmem [thread:$0]  %s48_s20, 512, %s50_s0, [#allocation6], %s465_s13, %s465_s13, %s466_s14  }
   0xf   :  { %s79_s27 = sshll.u32 %s470_s2, 4  ;;  %s80_s27 = int_to_ptr.vmem [resolvable:$true] %s79_s27 }
  0x10   :  { %85 = dma.hbm_to_vmem [thread:$0]  %s78_s26, 2048, %s80_s27, [#allocation9], %s465_s13, %s465_s13, %s466_s14  }
  0x11   :  { %456 = dma.done.wait [#allocation3], 256  }
  0x12   :  { %457 = vsyncadd [#allocation3], 4294967040 }
  0x13   :  { %458 = dma.done.wait [#allocation6], 768  }
  0x14   :  { %459 = vsyncadd [#allocation6], 4294966528 }
  0x15   :  { %460 = dma.done.wait [#allocation9], 4096  }
  0x16   :  { %461 = vsyncadd [#allocation9], 4294963200  ;;  %v117_v0 = vld [vmem:[#allocation7 + $0x18] sm:$0xff]  ;;  %v116_v1 = vld [vmem:[#allocation7 + $0x10] sm:$0xff]  ;;  %vm122_vm0 = vcmask 261120   ;;  %s260_s12 = sshll.u32 %s572_s8, 4  ;;  %s261_s12 = int_to_ptr.hbm [resolvable:$true] %s260_s12 }
  0x17   :  { %141 = vmatpush.msra.mxu0 %v117_v0  ;;  %v108_v2 = vld [vmem:[#allocation2] sm:$0xff]  ;;  %v110_v3 = vld [vmem:[#allocation5] sm:$0xff]  ;;  %v115_v4 = vld [vmem:[#allocation7 + $0x8] sm:$0xff] }
  0x18   :  { %v169_v5 = vld [vmem:[#allocation8 + $0x78] sm:$0xff]  ;;  %v168_v6 = vld [vmem:[#allocation8 + $0x70] sm:$0xff]  ;;  %v114_v7 = vld [vmem:[#allocation7] sm:$0xff]  ;;  %v112_v8 = vmul.f32 %v110_v3, %v108_v2 }
  0x19   :  { %142 = vmatpush.msra.mxu0 %v116_v1  ;;  %174 = vmatpush.msra.mxu1 %v169_v5  ;;  %v167_v9 = vld [vmem:[#allocation8 + $0x68] sm:$0xff]  ;;  %v166_v10 = vld [vmem:[#allocation8 + $0x60] sm:$0xff]  ;;  %v165_v11 = vld [vmem:[#allocation8 + $0x58] sm:$0xff] }
  0x1a   :  { %277 = vmatpush.msra.mxu3 %v169_v5  ;;  %v109_v12 = vld [vmem:[#allocation2 + $0x8] sm:$0xff]  ;;  %v111_v13 = vld [vmem:[#allocation5 + $0x8] sm:$0xff]  ;;  %v164_v14 = vld [vmem:[#allocation8 + $0x50] sm:$0xff] }
  0x1b   :  { %143 = vmatpush.msra.mxu0 %v115_v4  ;;  %175 = vmatpush.msra.mxu1 %v168_v6  ;;  %v113_v15 = vmul.f32 %v111_v13, %v109_v12  ;;  %v163_v16 = vld [vmem:[#allocation8 + $0x48] sm:$0xff]  ;;  %v162_v17 = vld [vmem:[#allocation8 + $0x40] sm:$0xff]  ;;  %v161_v18 = vld [vmem:[#allocation8 + $0x38] sm:$0xff] }
  0x1c   :  { %278 = vmatpush.msra.mxu3 %v168_v6  ;;  %v160_v19 = vld [vmem:[#allocation8 + $0x30] sm:$0xff]  ;;  %v159_v20 = vld [vmem:[#allocation8 + $0x28] sm:$0xff]  ;;  %v158_v21 = vld [vmem:[#allocation8 + $0x20] sm:$0xff] }
  0x1d   :  { %144 = vmatpush.msra.mxu0 %v114_v7  ;;  %176 = vmatpush.msra.mxu1 %v167_v9  ;;  %v157_v22 = vld [vmem:[#allocation8 + $0x18] sm:$0xff]  ;;  %v156_v23 = vld [vmem:[#allocation8 + $0x10] sm:$0xff]  ;;  %v155_v24 = vld [vmem:[#allocation8 + $0x8] sm:$0xff] }
  0x1e   :  { %275 = vmatmul.msk.f32.vlgmr.msra.gmra.mxu0 %vm122_vm0, %v112_v8  ;;  %279 = vmatpush.msra.mxu3 %v167_v9  ;;  %v154_v25 = vld [vmem:[#allocation8] sm:$0xff]  ;;  %v214_v26 = vld [vmem:[#allocation10 + $0x78] sm:$0xff]  ;;  %v213_v27 = vld [vmem:[#allocation10 + $0x70] sm:$0xff] }
  0x1f   :  { %177 = vmatpush.msra.mxu1 %v166_v10  ;;  %219 = vmatpush.msra.mxu2 %v214_v26  ;;  %v212_v28 = vld [vmem:[#allocation10 + $0x68] sm:$0xff]  ;;  %v211_v29 = vld [vmem:[#allocation10 + $0x60] sm:$0xff]  ;;  %v210_v30 = vld [vmem:[#allocation10 + $0x58] sm:$0xff] }
  0x20   :  { %280 = vmatpush.msra.mxu3 %v166_v10  ;;  %v209_v31 = vld [vmem:[#allocation10 + $0x50] sm:$0xff]  ;;  %v208_v32 = vld [vmem:[#allocation10 + $0x48] sm:$0xff]  ;;  %v207_v33 = vld [vmem:[#allocation10 + $0x40] sm:$0xff] }
  0x21   :  { %178 = vmatpush.msra.mxu1 %v165_v11  ;;  %220 = vmatpush.msra.mxu2 %v213_v27  ;;  %v206_v34 = vld [vmem:[#allocation10 + $0x38] sm:$0xff]  ;;  %v301_v35 = vld [vmem:[%s567_s3] ss:$0 sm:$0xff]  ;;  %v205_v36 = vld [vmem:[#allocation10 + $0x30] sm:$0xff] }
  0x22   :  { %281 = vmatpush.msra.mxu3 %v165_v11  ;;  %v204_v37 = vld [vmem:[#allocation10 + $0x28] sm:$0xff]  ;;  %v203_v40 = vld [vmem:[#allocation10 + $0x20] sm:$0xff]  ;;  %v202_v42 = vld [vmem:[#allocation10 + $0x18] sm:$0xff] }
  0x23   :  { %179 = vmatpush.msra.mxu1 %v164_v14  ;;  %221 = vmatpush.msra.mxu2 %v212_v28  ;;  %v201_v46 = vld [vmem:[#allocation10 + $0x10] sm:$0xff]  ;;  %v200_v47 = vld [vmem:[#allocation10 + $0x8] sm:$0xff]  ;;  %v199_v48 = vld [vmem:[#allocation10] sm:$0xff] }
  0x24   :  { %282 = vmatpush.msra.mxu3 %v164_v14  ;;  %v302_v49 = vld [vmem:[%s569_s5] ss:$0 sm:$0xff]  ;;  %s471_s5 = smov [#allocation11]  }
  0x25   :  { %180 = vmatpush.msra.mxu1 %v163_v16  ;;  %222 = vmatpush.msra.mxu2 %v211_v29  ;;  %v303_v56 = vld [vmem:[%s571_s7] ss:$0 sm:$0xff]  ;;  %s258_s7 = sshll.u32 %s471_s5, 4  ;;  %s259_s7 = int_to_ptr.vmem [resolvable:$true] %s258_s7 }
  0x26   :  { %276 = vmatmul.msk.f32.gmra.mxu0 %vm122_vm0, %v113_v15  ;;  %283 = vmatpush.msra.mxu3 %v163_v16 }
  0x27   :  { %181 = vmatpush.msra.mxu1 %v162_v17  ;;  %223 = vmatpush.msra.mxu2 %v210_v30 }
  0x28   :  { %284 = vmatpush.msra.mxu3 %v162_v17 }
  0x29   :  { %182 = vmatpush.msra.mxu1 %v161_v18  ;;  %224 = vmatpush.msra.mxu2 %v209_v31 }
  0x2a   :  { %285 = vmatpush.msra.mxu3 %v161_v18 }
  0x2b   :  { %183 = vmatpush.msra.mxu1 %v160_v19  ;;  %225 = vmatpush.msra.mxu2 %v208_v32 }
  0x2c   :  { %286 = vmatpush.msra.mxu3 %v160_v19 }
  0x2d   :  { %184 = vmatpush.msra.mxu1 %v159_v20  ;;  %226 = vmatpush.msra.mxu2 %v207_v33 }
  0x2e   :  { %287 = vmatpush.msra.mxu3 %v159_v20 }
  0x2f   :  { %185 = vmatpush.msra.mxu1 %v158_v21  ;;  %227 = vmatpush.msra.mxu2 %v206_v34 }
  0x30   :  { %288 = vmatpush.msra.mxu3 %v158_v21 }
  0x31   :  { %186 = vmatpush.msra.mxu1 %v157_v22  ;;  %228 = vmatpush.msra.mxu2 %v205_v36 }
  0x32   :  { %289 = vmatpush.msra.mxu3 %v157_v22 }
  0x33   :  { %187 = vmatpush.msra.mxu1 %v156_v23  ;;  %229 = vmatpush.msra.mxu2 %v204_v37 }
  0x34   :  { %290 = vmatpush.msra.mxu3 %v156_v23 }
  0x35   :  { %188 = vmatpush.msra.mxu1 %v155_v24  ;;  %230 = vmatpush.msra.mxu2 %v203_v40 }
  0x36   :  { %291 = vmatpush.msra.mxu3 %v155_v24 }
  0x37   :  { %189 = vmatpush.msra.mxu1 %v154_v25  ;;  %231 = vmatpush.msra.mxu2 %v202_v42 }
  0x38   :  { %292 = vmatpush.msra.mxu3 %v154_v25 }
  0x39   :  { %232 = vmatpush.msra.mxu2 %v201_v46 }
  0x3b   :  { %233 = vmatpush.msra.mxu2 %v200_v47 }
  0x3d   :  { %234 = vmatpush.msra.mxu2 %v199_v48 }
  0x9b   :  { %v146_v38 = vpop.f32.mrf.mxu0 }
  0x9c   :  { %v147_v39 = vadd.f32 %v301_v35, %v146_v38 }
  0x9e   :  { %v152_v41 = vmax.f32 %v147_v39, 0.0 }
  0xa0   :  { %190 = vmatmul.f32.vlgmr.msra.gmra.mxu1 %v152_v41 }
  0xa3   :  { %v149_v43 = vpop.f32.mrf.mxu0 }
  0xa4   :  { %v150_v44 = vadd.f32 %v301_v35, %v149_v43 }
  0xa6   :  { %v153_v45 = vmax.f32 %v150_v44, 0.0 }
  0xa8   :  { %193 = vmatmul.f32.vlgmr.msra.gmra.mxu3 %v153_v45 }
 0x11d   :  { %v191_v50 = vpop.f32.mrf.mxu1 }
 0x11e   :  { %v192_v51 = vadd.f32 %v302_v49, %v191_v50 }
 0x120   :  { %v197_v52 = vmax.f32 %v192_v51, 0.0 }
 0x122   :  { %235 = vmatmul.f32.vlgmr.msra.gmra.mxu2 %v197_v52 }
 0x12b   :  { %v194_v53 = vpop.f32.mrf.mxu3 }
 0x12c   :  { %v195_v54 = vadd.f32 %v302_v49, %v194_v53 }
 0x12e   :  { %v198_v55 = vmax.f32 %v195_v54, 0.0 }
 0x130   :  { %238 = vmatmul.f32.gmra.mxu2 %v198_v55 }
 0x1a5   :  { %v236_v57 = vpop.f32.mrf.mxu2 }
 0x1a6   :  { %v237_v58 = vadd.f32 %v303_v56, %v236_v57 }
 0x1a8   :  { %v242_v59 = vsub.f32 0.0, %v237_v58 }
 0x1aa   :  { %v244_v60 = vmul.f32 1.442695, %v242_v59 }
 0x1ac   :  { %304 = vpow2.f32 %v244_v60 }
 0x1b2   :  { %v305_v61 = vpop.eup %304 }
 0x1b3   :  { %v248_v62 = vadd.f32 1.0, %v305_v61  ;;  %v239_v63 = vpop.f32.mrf.mxu2 }
 0x1b4   :  { %v240_v0 = vadd.f32 %v303_v56, %v239_v63 }
 0x1b5   :  { %306 = vrcp.f32 %v248_v62 }
 0x1b6   :  { %v243_v1 = vsub.f32 0.0, %v240_v0 }
 0x1b8   :  { %v246_v2 = vmul.f32 1.442695, %v243_v1 }
 0x1ba   :  { %308 = vpow2.f32 %v246_v2 }
 0x1bb   :  { %v307_v3 = vpop.eup %306 }
 0x1bc   :  { %252 = vst [vmem:[#allocation11] sm:$0xff] %v307_v3 }
 0x1c0   :  { %v309_v4 = vpop.eup %308 }
 0x1c1   :  { %v249_v5 = vadd.f32 1.0, %v309_v4 }
 0x1c3   :  { %310 = vrcp.f32 %v249_v5 }
 0x1c9   :  { %v311_v6 = vpop.eup %310 }
 0x1ca   :  { %253 = vst [vmem:[#allocation11 + $0x8] sm:$0xff] %v311_v6 }
 0x1cb   :  { %266 = dma.vmem_to_hbm [thread:$0]  %s259_s7, 256, %s261_s12, [#allocation4], %s465_s13, %s465_s13, %s466_s14  }
 0x1cc   :  { %462 = dma.done.wait [#allocation4], 256  }
 0x1cd   :  { %463 = vsyncadd [#allocation4], 4294967040 }
 0x1ce   :  { %271 = vsyncpa [#allocation3], 1 }
 0x1cf   :  { %272 = vsyncpa [#allocation6], 1 }
 0x1d0   :  { %273 = vsyncpa [#allocation9], 1 }
 0x1d1   :  { %274 = vsyncpa [#allocation4], 1 }

</bundles_post_ra>
